<compile_context>
chip_gen: v6e
topology: v6e:2x2x1
jax: 0.10.0
libtpu: 0.0.40
codegen_flags: <defaults>
</compile_context>

<pallas_src>
import functools
import math

import jax
import jax.numpy as jnp
from jax.experimental import pallas as pl
from jax.experimental.pallas import tpu as pltpu


def _round_up(x, m):
    return ((x + m - 1) // m) * m


def _arcmargin_kernel(f_ref, w_ref, o_ref, *, k):
    """f_ref: [TB, D] features; w_ref: [k, D, TN] pre-normalized bf16 weight;
    o_ref: [TB, TN] cosine (max over k sub-centers)."""
    eps = 1e-12  # matches F.normalize eps (clamp on the norm)

    # Normalize features in f32 (v5e has no bf16 VPU/EUP), feed MXU in bf16.
    f = f_ref[...].astype(jnp.float32)                                     # [TB, D]
    inv_norm = jax.lax.rsqrt(
        jnp.maximum(jnp.sum(f * f, axis=1, keepdims=True), eps * eps))
    fn = (f * inv_norm).astype(jnp.bfloat16)                               # [TB, D]

    best = None
    for c in range(k):  # static unroll; k is small (=3)
        # Lane-dense matmul: [TB, D] @ [D, TN] -> f32 accumulation on the MXU.
        cos_c = jnp.dot(fn, w_ref[c], preferred_element_type=jnp.float32)  # [TB, TN]
        best = cos_c if best is None else jnp.maximum(best, cos_c)

    o_ref[...] = best.astype(o_ref.dtype)


def arc_margin_subcenter(features, weight, out_features, k,
                         *, block_b=128, block_n=512):
    """features: [B, in_features]; weight: [out_features * k, in_features]."""
    B, D = features.shape
    eps = 1e-12

    # Fold the weight normalization into HBM (done once, outside the kernel).
    w = weight.astype(jnp.float32)
    w = w / jnp.maximum(jnp.linalg.norm(w, axis=1, keepdims=True), eps)
    # Row r of `weight` = class r // k, sub-center r % k (matches the PyTorch
    # view(-1, out, k) + max(dim=2) grouping of the matmul columns).
    w3 = w.reshape(out_features, k, D).transpose(1, 2, 0)                  # [k, D, out]

    # Tile sizes respecting the (8, 128) block constraint; pad B / out so the
    # grid divides evenly and slice the padding off afterwards.
    TB = min(block_b, _round_up(B, 8))
    TN = min(block_n, _round_up(out_features, 128))
    Bp = _round_up(B, TB)
    Np = _round_up(out_features, TN)

    f_p = jnp.pad(features, ((0, Bp - B), (0, 0)))
    w_p = jnp.pad(w3, ((0, 0), (0, 0), (0, Np - out_features))).astype(jnp.bfloat16)

    grid = (Bp // TB, Np // TN)
    out = pl.pallas_call(
        functools.partial(_arcmargin_kernel, k=k),
        out_shape=jax.ShapeDtypeStruct((Bp, Np), jnp.float32),
        grid=grid,
        in_specs=[
            # Features: same block for every out-tile j -> DMA'd once per i.
            pl.BlockSpec((TB, D), lambda i, j: (i, 0)),
            # Weight: streamed per out-tile, lane-dense in TN.
            pl.BlockSpec((k, D, TN), lambda i, j: (0, 0, j)),
        ],
        out_specs=pl.BlockSpec((TB, TN), lambda i, j: (i, j)),
        compiler_params=pltpu.CompilerParams(
            dimension_semantics=("parallel", "parallel"),
        ),
    )(f_p, w_p)

    return out[:B, :out_features]


def _reference(features, weight, out_features, k):
    eps = 1e-12
    fn = features / jnp.maximum(
        jnp.linalg.norm(features, axis=1, keepdims=True), eps)
    wn = weight / jnp.maximum(
        jnp.linalg.norm(weight, axis=1, keepdims=True), eps)
    cos_all = fn @ wn.T                                   # [B, out*k]
    cos_all = cos_all.reshape(-1, out_features, k)
    return jnp.max(cos_all, axis=2)


if __name__ == "__main__":
    B = 8
    in_features = 32
    out_features = 8
    k = 3

    key = jax.random.PRNGKey(0)
    kf, kw = jax.random.split(key)

    features = jax.random.normal(kf, (B, in_features), dtype=jnp.float32)

    # Deterministic init matching reset_parameters(): uniform(-stdv, stdv)
    stdv = 1.0 / math.sqrt(in_features)
    weight = jax.random.uniform(
        kw, (out_features * k, in_features),
        minval=-stdv, maxval=stdv, dtype=jnp.float32)

    out = arc_margin_subcenter(features, weight, out_features, k)
    out = jax.block_until_ready(out)

    ref = _reference(features, weight, out_features, k)
    assert out.shape == (B, out_features)
    # bf16 MXU operands with f32 accumulation -> relaxed tolerance vs f32 ref.
    assert jnp.allclose(out, ref, atol=2e-2, rtol=2e-2)

    print("KERNEL_OK")
</pallas_src>

<mosaic_0001>
module attributes {stable_mosaic.version = 11 : i64} {
  func.func @_arcmargin_kernel(%arg0: i32, %arg1: i32, %arg2: memref<8x32xf32, #tpu.memory_space<vmem>>, %arg3: memref<3x32x128xbf16, #tpu.memory_space<vmem>>, %arg4: memref<8x128xf32, #tpu.memory_space<vmem>>) attributes {dimension_semantics = [#tpu.dimension_semantics<parallel>, #tpu.dimension_semantics<parallel>], iteration_bounds = array<i64: 1, 1>, scalar_prefetch = 0 : i64, scratch_operands = 0 : i64, tpu.core_type = #tpu.core_type<tc>, window_params = [{transform_indices = @transform_0, window_bounds = array<i64: 8, 32>}, {transform_indices = @transform_1, window_bounds = array<i64: 3, 32, 128>}, {transform_indices = @transform_2, window_bounds = array<i64: 8, 128>}]} {
    %c0 = arith.constant 0 : index
    %c0_0 = arith.constant 0 : index
    %0 = vector.load %arg2[%c0, %c0_0] : memref<8x32xf32, #tpu.memory_space<vmem>>, vector<8x32xf32>
    %1 = arith.mulf %0, %0 : vector<8x32xf32>
    %cst = arith.constant dense<0.000000e+00> : vector<8xf32>
    %2 = vector.multi_reduction <add>, %1, %cst [1] : vector<8x32xf32> to vector<8xf32>
    %3 = vector.shape_cast %2 : vector<8xf32> to vector<8x1xf32>
    %cst_1 = arith.constant 1.000000e-24 : f32
    %4 = vector.broadcast %cst_1 : f32 to vector<8x1xf32>
    %5 = arith.maximumf %3, %4 : vector<8x1xf32>
    %6 = math.rsqrt %5 : vector<8x1xf32>
    %7 = vector.broadcast %6 : vector<8x1xf32> to vector<8x32xf32>
    %8 = arith.mulf %0, %7 : vector<8x32xf32>
    %9 = arith.truncf %8 : vector<8x32xf32> to vector<8x32xbf16>
    %c0_2 = arith.constant 0 : index
    %c0_3 = arith.constant 0 : index
    %c0_4 = arith.constant 0 : index
    %10 = vector.load %arg3[%c0_2, %c0_3, %c0_4] : memref<3x32x128xbf16, #tpu.memory_space<vmem>>, vector<1x32x128xbf16>
    %11 = vector.shape_cast %10 : vector<1x32x128xbf16> to vector<32x128xbf16>
    %cst_5 = arith.constant dense<0.000000e+00> : vector<8x128xf32>
    %12 = tpu.matmul %9, %11, %cst_5 {dimension_numbers = #tpu.dot_dimension_numbers<[1], [0], [0], [1], [0, 0, 1, 1], [], []>} : vector<8x32xbf16>, vector<32x128xbf16>, vector<8x128xf32> -> vector<8x128xf32>
    %c1 = arith.constant 1 : index
    %c0_6 = arith.constant 0 : index
    %c0_7 = arith.constant 0 : index
    %13 = vector.load %arg3[%c1, %c0_6, %c0_7] : memref<3x32x128xbf16, #tpu.memory_space<vmem>>, vector<1x32x128xbf16>
    %14 = vector.shape_cast %13 : vector<1x32x128xbf16> to vector<32x128xbf16>
    %cst_8 = arith.constant dense<0.000000e+00> : vector<8x128xf32>
    %15 = tpu.matmul %9, %14, %cst_8 {dimension_numbers = #tpu.dot_dimension_numbers<[1], [0], [0], [1], [0, 0, 1, 1], [], []>} : vector<8x32xbf16>, vector<32x128xbf16>, vector<8x128xf32> -> vector<8x128xf32>
    %16 = arith.maximumf %12, %15 : vector<8x128xf32>
    %c2 = arith.constant 2 : index
    %c0_9 = arith.constant 0 : index
    %c0_10 = arith.constant 0 : index
    %17 = vector.load %arg3[%c2, %c0_9, %c0_10] : memref<3x32x128xbf16, #tpu.memory_space<vmem>>, vector<1x32x128xbf16>
    %18 = vector.shape_cast %17 : vector<1x32x128xbf16> to vector<32x128xbf16>
    %cst_11 = arith.constant dense<0.000000e+00> : vector<8x128xf32>
    %19 = tpu.matmul %9, %18, %cst_11 {dimension_numbers = #tpu.dot_dimension_numbers<[1], [0], [0], [1], [0, 0, 1, 1], [], []>} : vector<8x32xbf16>, vector<32x128xbf16>, vector<8x128xf32> -> vector<8x128xf32>
    %20 = arith.maximumf %16, %19 : vector<8x128xf32>
    %c0_12 = arith.constant 0 : index
    %c0_13 = arith.constant 0 : index
    %21 = vector.load %arg4[%c0_12, %c0_13] : memref<8x128xf32, #tpu.memory_space<vmem>>, vector<8x128xf32>
    tpu.vector_store %arg4[%c0_12, %c0_13], %20 {strides = array<i32>} : memref<8x128xf32, #tpu.memory_space<vmem>>, vector<8x128xf32>,
    return
  }
  func.func @transform_0(%arg0: i32, %arg1: i32) -> (i32, i32) {
    %c0_i32 = arith.constant 0 : i32
    %c0_i32_0 = arith.constant 0 : i32
    return %arg0, %c0_i32 : i32, i32
  }
  func.func @transform_1(%arg0: i32, %arg1: i32) -> (i32, i32, i32) {
    %c0_i32 = arith.constant 0 : i32
    %c0_i32_0 = arith.constant 0 : i32
    %c0_i32_1 = arith.constant 0 : i32
    return %c0_i32, %c0_i32_0, %arg1 : i32, i32, i32
  }
  func.func @transform_2(%arg0: i32, %arg1: i32) -> (i32, i32) {
    %c0_i32 = arith.constant 0 : i32
    return %arg0, %arg1 : i32, i32
  }
}

</mosaic_0001>

<bundles_post_ra>
// kernel: tpu_custom_call.1
= control target key start
LH: loop header
LB: loop body
LE: loop exit
PB: predicated region body
PF: predicated region fallthrough
CT: control target
= control target key end

     0   :  { %7 = vsyncpa [#allocation3], 0  ;;  %s402_s0 = inlined_call_operand.hbm [shape: f32[8,32], index: 0, kind: input, shape index: {}]   ;;  %s403_s1 = inlined_call_operand.hbm [shape: bf16[3,32,128], index: 1, kind: input, shape index: {}]   ;;  %s404_s2 = inlined_call_operand.hbm [shape: f32[8,128], index: 2, kind: output, shape index: {}]  }
   0x1   :  { %8 = vsyncpa [#allocation6], 0 }
   0x2   :  { %9 = vsyncpa [#allocation4], 0  ;;  %s364_s9 = smov [#allocation2]   ;;  %s365_s11 = smov [#allocation5]  }
   0x3   :  { %s16_s10 = sshll.u32 %s364_s9, 4  ;;  %s25_s12 = sshll.u32 %s365_s11, 4  ;;  %s17_s10 = int_to_ptr.vmem [resolvable:$true] %s16_s10  ;;  %s26_s12 = int_to_ptr.vmem [resolvable:$true] %s25_s12 }
   0x4   :  { %s306_s13 = scalar_lea.vmem %s17_s10, 128  ;;  %p311_p1 = scmp.lt.s32.totalorder %s17_s10, %s17_s10 }
   0x5   :  { %p307_p0 = scmp.ne.s32.totalorder %s17_s10, %s306_s13  ;;  %p312_p2 = scmp.lt.s32.totalorder %s306_s13, %s306_s13 }
   0x7   :  { %p313_p3 = por %p312_p2, %p311_p1 }
   0x9   :  { %p314_p4 = pnand %p313_p3, %p307_p0 }
   0xb   :  { %317 = shalt.err (!%p314_p4)
}
   0xc   :  { %19 = dma.hbm_to_vmem [thread:$0]  %s402_s0, 128, %s17_s10, [#allocation3]  }
   0xd   :  { %s326_s16 = scalar_lea.vmem %s26_s12, 768  ;;  %p331_p6 = scmp.lt.s32.totalorder %s26_s12, %s26_s12 }
   0xe   :  { %p327_p5 = scmp.ne.s32.totalorder %s26_s12, %s326_s16  ;;  %p332_p7 = scmp.lt.s32.totalorder %s326_s16, %s326_s16 }
  0x10   :  { %p333_p8 = por %p332_p7, %p331_p6 }
  0x12   :  { %p334_p9 = pnand %p333_p8, %p327_p5 }
  0x14   :  { %337 = shalt.err (!%p334_p9)
}
  0x15   :  { %s366_s17 = smov 64   ;;  %s367_s18 = smov 4  }
  0x16   :  { %31 = dma.hbm_to_vmem [thread:$0]  %s403_s1, 768, %s26_s12, [#allocation6], %s366_s17, %s366_s17, %s367_s18  }
  0x17   :  { %358 = dma.done.wait [#allocation3], 128  }
  0x18   :  { %359 = vsyncadd [#allocation3], 4294967168 }
  0x19   :  { %360 = dma.done.wait [#allocation6], 768  }
  0x1a   :  { %361 = vsyncadd [#allocation6], 4294966528  ;;  %v39_v0 = vld [vmem:[#allocation2] sm:$0xff]  ;;  %vm41_vm0 = vcmask 261120   ;;  %v290_v3 = vld [vmem:[#allocation5 + $0x8] sm:$0xff]   ;;  %v368_v5 = vmov 0.0  }
  0x1b   :  { %v40_v1 = vmul.f32 %v39_v0, %v39_v0  ;;  %v291_v4 = vld [vmem:[#allocation5 + $0x18] sm:$0xff]   ;;  %259 = vmatprep.subr.bf16.mxu0 %v368_v5  ;;  %267 = vmatprep.subr.bf16.mxu1 %v368_v5  ;;  %v292_v6 = vld [vmem:[#allocation5] sm:$0xff]   ;;  %v293_v7 = vld [vmem:[#allocation5 + $0x10] sm:$0xff]   ;;  %vm369_vm1 = vmmov 0   ;;  %s370_s0 = smov [#allocation7]  }
  0x1c   :  { %260 = vmatpush3.bf16.msra.mxu0 %v290_v3  ;;  %268 = vmatpush3.bf16.msra.mxu1 %v291_v4  ;;  %v294_v12 = vld [vmem:[#allocation5 + $0x28] sm:$0xff]   ;;  %v295_v14 = vld [vmem:[#allocation5 + $0x20] sm:$0xff]   ;;  %s231_s1 = sshll.u32 %s370_s0, 4  ;;  %s232_s1 = int_to_ptr.vmem [resolvable:$true] %s231_s1 }
  0x1d   :  { %v42_v2 = vsel %vm41_vm0, %v40_v1, 0.0  ;;  %261 = vmatprep.subr.bf16.mxu0 %v368_v5  ;;  %269 = vmatprep.subr.bf16.mxu1 %v368_v5  ;;  %s338_s21 = scalar_lea.vmem %s232_s1, 128  ;;  %p343_p11 = scmp.lt.s32.totalorder %s232_s1, %s232_s1 }
  0x1e   :  { %43 = vadd.xlane.f32.xlu0 %v42_v2  ;;  %263 = vmatprep.mubr.msk.bf16.mxu0 %vm369_vm1, %v368_v5  ;;  %p339_p10 = scmp.ne.s32.totalorder %s232_s1, %s338_s21  ;;  %p344_p12 = scmp.lt.s32.totalorder %s338_s21, %s338_s21 }
  0x1f   :  { %271 = vmatprep.mubr.msk.bf16.mxu1 %vm369_vm1, %v368_v5 }
  0x20   :  { %262 = vmatpush3.bf16.msra.mxu0 %v292_v6  ;;  %270 = vmatpush3.bf16.msra.mxu1 %v293_v7  ;;  %p345_p13 = por %p344_p12, %p343_p11 }
  0x21   :  { %275 = vmatprep.subr.bf16.mxu0 %v368_v5 }
  0x22   :  { %p346_p0 = pnand %p345_p13, %p339_p10 }
  0xa7   :  { %v44_v8 = vpop.xlane.xlu0 %43 }
  0xa8   :  { %v45_v9 = vmax.f32 %v44_v8, 1e-24 }
  0xaa   :  { %296 = vrsqrt.f32 %v45_v9 }
  0xb7   :  { %v297_v10 = vpop.eup %296 }
  0xb8   :  { %v47_v11 = vmul.f32 %v297_v10, %v39_v0 }
  0xba   :  { %v48_v13 = vpack.c.bf16 %v47_v11, %v47_v11 }
  0xbc   :  { %264 = vmatmul.mubr.msk.bf16.vlgmr.msra.gmra.mxu0 %vm41_vm0, %v48_v13  ;;  %272 = vmatmul.mubr.msk.bf16.vlgmr.msra.gmra.mxu1 %vm41_vm0, %v48_v13 }
  0xbd   :  { %276 = vmatpush3.bf16.msra.mxu0 %v294_v12  ;;  %279 = vmatprep.mubr.msk.bf16.mxu0 %vm369_vm1, %v368_v5 }
  0xbe   :  { %277 = vmatprep.subr.bf16.mxu0 %v368_v5 }
  0xc1   :  { %278 = vmatpush3.bf16.msra.mxu0 %v295_v14 }
  0xc4   :  { %280 = vmatmul.mubr.msk.bf16.vlgmr.msra.gmra.mxu0 %vm41_vm0, %v48_v13 }
 0x17c   :  { %v102_v15 = vpop.f32.mrf.mxu0  ;;  %v159_v16 = vpop.f32.mrf.mxu1 }
 0x17d   :  { %v165_v23 = vmax.f32 %v102_v15, %v159_v16 }
 0x17e   :  { %v265_v17 = vpop.f32.mrf.mxu0  ;;  %v273_v18 = vpop.f32.mrf.mxu1 }
 0x180   :  { %v105_v19 = vpop.f32.mrf.mxu0  ;;  %v162_v20 = vpop.f32.mrf.mxu1 }
 0x182   :  { %v266_v21 = vpop.f32.mrf.mxu0  ;;  %v274_v22 = vpop.f32.mrf.mxu1 }
 0x184   :  { %v217_v24 = vpop.f32.mrf.mxu0 }
 0x185   :  { %v223_v25 = vmax.f32 %v165_v23, %v217_v24 }
 0x186   :  { %v281_v26 = vpop.f32.mrf.mxu0 }
 0x187   :  { %224 = vst [vmem:[#allocation7] sm:$0xff] %v223_v25 }
 0x188   :  { %v220_v27 = vpop.f32.mrf.mxu0 }
 0x189   :  { %349 = shalt.err (!%p346_p0)
}
 0x18a   :  { %234 = dma.vmem_to_hbm [thread:$0]  %s232_s1, 128, %s404_s2, [#allocation4]   ;;  %v282_v28 = vpop.f32.mrf.mxu0 }
 0x18b   :  { %362 = dma.done.wait [#allocation4], 128  }
 0x18c   :  { %363 = vsyncadd [#allocation4], 4294967168 }
 0x18d   :  { %238 = vsyncpa [#allocation3], 1 }
 0x18e   :  { %239 = vsyncpa [#allocation6], 1 }
 0x18f   :  { %240 = vsyncpa [#allocation4], 1 }

</bundles_post_ra>
